<compile_context>
chip_gen: v6e
topology: v6e:2x2x1
jax: 0.10.0
libtpu: 0.0.40
codegen_flags: <defaults>
</compile_context>

<pallas_src>
import functools

import jax
import jax.numpy as jnp
from jax.experimental import pallas as pl
from jax.experimental.pallas import tpu as pltpu

_LANE = 128
_SUBLANE = 8
# Widest lane-dense column candidates (power-of-two, descending).
_COL_CANDIDATES = (8192, 4096, 2048, 1024, 512, 256, 128)


@functools.lru_cache(maxsize=1)
def _tpu_config():
    """Per-generation tile target + grid-axis semantics (cached)."""
    kind = ""
    try:
        kind = jax.devices()[0].device_kind.lower()
    except Exception:  # pragma: no cover - defensive; fall back to safe defaults
        pass
    if "v7" in kind:
        # 2 TCs share HBM: shard the row axis across cores. 4 MiB tiles keep
        # double-buffered in+out (~16 MiB) inside the 32 MiB scoped VMEM.
        return (4 * 1024 * 1024, (pltpu.CORE_PARALLEL,))
    if "v6" in kind:
        return (4 * 1024 * 1024, ("parallel",))
    # v5e / unknown: 16 MiB scoped VMEM default -> keep ~2 MiB tiles.
    return (2 * 1024 * 1024, ("parallel",))


def _scale_kernel(scale_ref, x_ref, o_ref):
    # Pure streaming elementwise op: o = x * scale (scale read from SMEM).
    o_ref[...] = x_ref[...] * scale_ref[0].astype(x_ref.dtype)


def _tile_plan(R, C, itemsize, target_bytes):
    """Row-tile size (dtype-aware sublane multiple) and grid length."""
    # Packed-sublane multiple: 8 for 4-byte, 16 for 2-byte, 32 for 1-byte dtypes.
    sub = max(_SUBLANE, 32 // max(itemsize, 1))
    tr = max(sub, (target_bytes // (C * itemsize)) // sub * sub)
    if tr >= R:
        tr = R  # single full-extent block (valid even if R < sub)
    return tr, pl.cdiv(R, tr)


def _scale_slab(x2d, scale_arr, tr, grid_len, semantics):
    """Elementwise scale of a lane-dense (R, C) slab (C % 128 == 0)."""
    R, C = x2d.shape
    itemsize = jnp.dtype(x2d.dtype).itemsize
    n = R * C
    return pl.pallas_call(
        _scale_kernel,
        out_shape=jax.ShapeDtypeStruct((R, C), x2d.dtype),
        grid=(grid_len,),  # partial last block -> masked edge stores
        in_specs=[
            pl.BlockSpec(memory_space=pltpu.MemorySpace.SMEM),  # coeff scalar
            pl.BlockSpec((tr, C), lambda i: (i, 0)),
        ],
        out_specs=pl.BlockSpec((tr, C), lambda i: (i, 0)),
        compiler_params=pltpu.CompilerParams(
            dimension_semantics=semantics,
        ),
        cost_estimate=pl.CostEstimate(
            flops=n, transcendentals=0, bytes_accessed=2 * n * itemsize
        ),
    )(scale_arr, x2d)


def _scale_any(x, scale, *, force_pallas=False):
    """x * scale for arbitrary shapes.

    Large gradients stream through the Pallas kernel; small / unaligned ones
    stay on the fusable XLA multiply (no custom-call fusion barrier).
    """
    scale = jnp.asarray(scale, jnp.float32)
    n = x.size
    if n == 0 or n % _LANE != 0:
        return x * scale.astype(x.dtype)

    # Widest lane-dense column count that factors n exactly.
    C = _LANE
    for cand in _COL_CANDIDATES:
        if n % cand == 0:
            C = cand
            break
    R = n // C
    itemsize = jnp.dtype(x.dtype).itemsize
    target_bytes, semantics = _tpu_config()
    tr, grid_len = _tile_plan(R, C, itemsize, target_bytes)

    if grid_len < 2 and not force_pallas:
        # Single-block Pallas call would be dominated by custom-call + step
        # overhead and blocks fusion; let XLA fuse the multiply instead.
        return x * scale.astype(x.dtype)

    if grid_len < 2:
        semantics = ("arbitrary",)

    slab = x.reshape(R, C)
    out = _scale_slab(slab, scale.reshape(1), tr, grid_len, semantics)
    return out.reshape(x.shape)


# --- GRL: forward identity, backward grad -> -coeff * grad -------------------

@jax.custom_vjp
def _grl_prim(x, coeff):
    del coeff
    return x


def _grl_fwd(x, coeff):
    return x, coeff


def _grl_bwd(coeff, g):
    # Matches GradientReverseFunction.backward: grad_output.neg() * coeff
    return _scale_any(g, -coeff), jnp.zeros_like(coeff)


_grl_prim.defvjp(_grl_fwd, _grl_bwd)


def grl(x, coeff=1.0):
    """Gradient Reversal Layer (forward identity; backward reverses + scales).

    coeff may be a Python float or a JAX scalar; it is carried as a runtime
    f32 value so changing it does not retrace/recompile.
    """
    return _grl_prim(x, jnp.asarray(coeff, jnp.float32))


if __name__ == "__main__":
    key = jax.random.PRNGKey(0)
    # NCHW input, small shapes consistent with the module (GRL has no params).
    x = jax.random.normal(key, (2, 4, 16, 16), dtype=jnp.float32)

    # Forward: strict identity, no kernel.
    y = jax.block_until_ready(grl(x, 1.0))
    assert y.shape == x.shape and y.dtype == x.dtype
    assert bool(jnp.all(y == x))

    # Backward at GRL-sized activations: routed to the fusable XLA multiply.
    coeff = 2.5
    g = jax.grad(lambda t: jnp.sum(grl(t, coeff) * 3.0))(x)
    g = jax.block_until_ready(g)
    assert bool(jnp.allclose(g, -coeff * 3.0 * jnp.ones_like(x)))

    # Exercise the Pallas kernel explicitly.
    # (1) Forced single-block path on the small slab (scale copy check).
    z = jax.block_until_ready(_scale_any(x, -coeff, force_pallas=True))
    assert z.shape == x.shape and z.dtype == x.dtype
    assert bool(jnp.allclose(z, -coeff * x))

    # (2) Medium gradient (~6.75 MiB f32): wide C=8192 slab, grid >= 2 with a
    #     masked partial last block — the natural Pallas path.
    xm = jax.random.normal(key, (4, 64, 72, 96), dtype=jnp.float32)
    gm = jax.grad(lambda t: jnp.sum(grl(t, coeff)))(xm)
    gm = jax.block_until_ready(gm)
    assert bool(jnp.allclose(gm, -coeff * jnp.ones_like(xm)))

    # (3) bf16 gradient through the kernel (16-row packed-sublane tiling).
    xb = xm.astype(jnp.bfloat16)
    zb = jax.block_until_ready(_scale_any(xb, 0.5, force_pallas=True))
    assert zb.dtype == jnp.bfloat16
    assert bool(jnp.allclose(zb.astype(jnp.float32),
                             (xb * jnp.asarray(0.5, jnp.bfloat16)).astype(jnp.float32)))

    print("KERNEL_OK")
</pallas_src>

<mosaic_0001>
module attributes {stable_mosaic.version = 11 : i64} {
  func.func @_scale_kernel(%arg0: i32, %arg1: memref<1xf32, #tpu.memory_space<smem>>, %arg2: memref<1x2048xf32, #tpu.memory_space<vmem>>, %arg3: memref<1x2048xf32, #tpu.memory_space<vmem>>) attributes {dimension_semantics = [#tpu.dimension_semantics<arbitrary>], iteration_bounds = array<i64: 1>, scalar_prefetch = 0 : i64, scratch_operands = 0 : i64, tpu.core_type = #tpu.core_type<tc>, window_params = [{transform_indices = @transform_0, window_bounds = array<i64: 1>}, {transform_indices = @transform_1, window_bounds = array<i64: 1, 2048>}, {transform_indices = @transform_2, window_bounds = array<i64: 1, 2048>}]} {
    %c0 = arith.constant 0 : index
    %c0_0 = arith.constant 0 : index
    %0 = vector.load %arg2[%c0, %c0_0] : memref<1x2048xf32, #tpu.memory_space<vmem>>, vector<1x2048xf32>
    %c0_1 = arith.constant 0 : index
    %1 = memref.load %arg1[%c0_1] : memref<1xf32, #tpu.memory_space<smem>>
    %2 = vector.broadcast %1 : f32 to vector<1x2048xf32>
    %3 = arith.mulf %0, %2 : vector<1x2048xf32>
    %c0_2 = arith.constant 0 : index
    %c0_3 = arith.constant 0 : index
    %4 = vector.load %arg3[%c0_2, %c0_3] : memref<1x2048xf32, #tpu.memory_space<vmem>>, vector<1x2048xf32>
    tpu.vector_store %arg3[%c0_2, %c0_3], %3 {strides = array<i32>} : memref<1x2048xf32, #tpu.memory_space<vmem>>, vector<1x2048xf32>,
    return
  }
  func.func @transform_0(%arg0: i32) -> i32 {
    %c0_i32 = arith.constant 0 : i32
    %c0_i32_0 = arith.constant 0 : i32
    return %c0_i32 : i32
  }
  func.func @transform_1(%arg0: i32) -> (i32, i32) {
    %c0_i32 = arith.constant 0 : i32
    %c0_i32_0 = arith.constant 0 : i32
    return %arg0, %c0_i32 : i32, i32
  }
  func.func @transform_2(%arg0: i32) -> (i32, i32) {
    %c0_i32 = arith.constant 0 : i32
    %c0_i32_0 = arith.constant 0 : i32
    return %arg0, %c0_i32 : i32, i32
  }
}

</mosaic_0001>

<bundles_post_ra>
// kernel: tpu_custom_call.1
= control target key start
LH: loop header
LB: loop body
LE: loop exit
PB: predicated region body
PF: predicated region fallthrough
CT: control target
= control target key end

     0   :  { %8 = vsyncpa [#allocation4], 0  ;;  %s120_s0 = inlined_call_operand.<no memory space> [shape: f32[1], index: 0, kind: input, shape index: {}]   ;;  %s121_s1 = inlined_call_operand.hbm [shape: f32[1,2048], index: 1, kind: input, shape index: {}]   ;;  %s122_s2 = inlined_call_operand.hbm [shape: f32[1,2048], index: 2, kind: output, shape index: {}]  }
   0x1   :  { %9 = vsyncpa [#allocation5], 0  ;;  %s94_s9 = smov [#allocation3]  }
   0x2   :  { %s18_s10 = sshll.u32 %s94_s9, 4  ;;  %s19_s10 = int_to_ptr.vmem [resolvable:$true] %s18_s10 }
   0x3   :  { %s58_s11 = scalar_lea.vmem %s19_s10, 256  ;;  %p63_p1 = scmp.lt.s32.totalorder %s19_s10, %s19_s10 }
   0x4   :  { %p59_p0 = scmp.ne.s32.totalorder %s19_s10, %s58_s11  ;;  %p64_p2 = scmp.lt.s32.totalorder %s58_s11, %s58_s11 }
   0x6   :  { %p65_p3 = por %p64_p2, %p63_p1 }
   0x8   :  { %p66_p4 = pnand %p65_p3, %p59_p0 }
   0xa   :  { %69 = shalt.err (!%p66_p4)
}
   0xb   :  { %21 = dma.hbm_to_vmem [thread:$0]  %s121_s1, 256, %s19_s10, [#allocation4]  }
   0xc   :  { %90 = dma.done.wait [#allocation4], 256  }
   0xd   :  { %91 = vsyncadd [#allocation4], 4294967040  ;;  %v28_v0 = vstv %s120_s0  ;;  %s95_s16 = smov [#allocation6]   ;;  %v25_v1 = vld [vmem:[#allocation3] sm:$0xff]  ;;  %v26_v2 = vld [vmem:[#allocation3 + $0x8] sm:$0xff] }
   0xe   :  { %s39_s17 = sshll.u32 %s95_s16, 4  ;;  %v29_v3 = vmul.f32 %v28_v0, %v25_v1  ;;  %v30_v4 = vmul.f32 %v28_v0, %v26_v2  ;;  %s40_s17 = int_to_ptr.vmem [resolvable:$true] %s39_s17 }
   0xf   :  { %s70_s18 = scalar_lea.vmem %s40_s17, 256  ;;  %p75_p6 = scmp.lt.s32.totalorder %s40_s17, %s40_s17 }
  0x10   :  { %31 = vst [vmem:[#allocation6] sm:$0xff] %v29_v3  ;;  %32 = vst [vmem:[#allocation6 + $0x8] sm:$0xff] %v30_v4  ;;  %p71_p5 = scmp.ne.s32.totalorder %s40_s17, %s70_s18  ;;  %p76_p7 = scmp.lt.s32.totalorder %s70_s18, %s70_s18 }
  0x12   :  { %p77_p8 = por %p76_p7, %p75_p6 }
  0x14   :  { %p78_p9 = pnand %p77_p8, %p71_p5 }
  0x16   :  { %81 = shalt.err (!%p78_p9)
}
  0x17   :  { %42 = dma.vmem_to_hbm [thread:$0]  %s40_s17, 256, %s122_s2, [#allocation5]  }
  0x18   :  { %92 = dma.done.wait [#allocation5], 256  }
  0x19   :  { %93 = vsyncadd [#allocation5], 4294967040 }
  0x1a   :  { %46 = vsyncpa [#allocation4], 1 }
  0x1b   :  { %47 = vsyncpa [#allocation5], 1 }

</bundles_post_ra>
